<compile_context>
chip_gen: v5e
topology: v5e:2x2
jax: 0.10.0
libtpu: 0.0.40
codegen_flags: <defaults>
</compile_context>

<pallas_src>
import functools

import jax
import jax.numpy as jnp
from jax.experimental import pallas as pl
from jax.experimental.pallas import tpu as pltpu


def _round_up(x, m):
    return (x + m - 1) // m * m


def _packed_matvec_kernel(y_ref, bd_ref, o_ref, *, precision):
    # y_ref : (tm, L) lane-dense packed rows of y (streamed / double-buffered)
    # bd_ref: (L, L)  block-diagonal matrix with A^T on the diagonal (resident)
    # o_ref : (tm, L) lane-dense packed rows of dy
    o_ref[...] = jnp.dot(
        y_ref[...],
        bd_ref[...],
        preferred_element_type=jnp.float32,
        precision=precision,
    ).astype(o_ref.dtype)


def simple_linear_system_forward(t, y, A, *, tm=4096, force_pallas=False,
                                 use_bf16=False, materialize_A_exp=True):
    """Pallas implementation of SimpleLinearSystem.forward.

    t: (T, B)     -- only the shape is used (matches the PyTorch module)
    y: (T, B, n)  float32
    A: (n, n)     float32
    returns (dy, A_exp) with dy: (T, B, n), A_exp: (T, B, n, n)
    """
    T, B, n = y.shape
    M = T * B

    # PyTorch's .expand is a view; a dense JAX output is a real (T,B,n,n) HBM write.
    # Pass materialize_A_exp=False when the caller can broadcast at the consumer.
    if materialize_A_exp:
        A_exp = jnp.broadcast_to(A[None, None, :, :], (t.shape[0], t.shape[1], n, n))
    else:
        A_exp = A[None, None, :, :]

    # Tiny problems: pallas_call launch + per-step overhead dwarfs the compute.
    if not force_pallas and M * n < (1 << 18):
        dy = jnp.einsum("ij,tbj->tbi", A, y, precision=jax.lax.Precision.HIGHEST)
        return dy, A_exp

    compute_dtype = jnp.bfloat16 if use_bf16 else y.dtype
    precision = (jax.lax.Precision.DEFAULT if use_bf16
                 else jax.lax.Precision.HIGHEST)  # f32 parity with PyTorch matmul

    # ---- lane-dense packing: fold `pack` rows into one >=128-lane row --------------
    pack = (128 // n) if n < 128 else 1
    Lraw = pack * n                 # payload lanes per packed row
    L = _round_up(Lraw, 128)        # physical lanes (always a multiple of 128)

    # Block-diagonal A^T embedded top-left in an (L, L) matrix:
    #   [y_0 | y_1 | ... | y_{pack-1} | 0..] @ bd = [A y_0 | A y_1 | ... | 0..]
    At = A.T.astype(compute_dtype)
    bd_core = jnp.kron(jnp.eye(pack, dtype=compute_dtype), At) if pack > 1 else At
    if L != Lraw:
        bd = jnp.zeros((L, L), compute_dtype).at[:Lraw, :Lraw].set(bd_core)
    else:
        bd = bd_core

    y_flat = y.reshape(M, n).astype(compute_dtype)
    M1 = _round_up(M, pack)
    if M1 != M:                     # rare: a few extra rows so the fold is exact
        y_flat = jnp.pad(y_flat, ((0, M1 - M), (0, 0)))
    Mp = M1 // pack
    y_packed = y_flat.reshape(Mp, Lraw)   # pure reshape when 128 % n == 0
    if L != Lraw:                   # only when 128 % n != 0: keep stores unmasked
        y_packed = jnp.pad(y_packed, ((0, 0), (0, L - Lraw)))

    # ---- row tiling ------------------------------------------------------------
    # A (tm, L) f32 tile is tm*L*4 bytes, so VMEM is not the limiter for tm<=8192.
    # Keep >= 2 grid steps whenever possible (so both v7x TensorCores get work),
    # and let Pallas handle the ragged last block (no wrapper-side row padding).
    if Mp <= 8:
        tm_eff = Mp                                    # single full-extent tile
    else:
        tm_eff = min(tm, _round_up(pl.cdiv(Mp, 2), 8))
        tm_eff = max(8, (tm_eff // 8) * 8)             # multiple of 8 (8,128 rule)
    grid = (pl.cdiv(Mp, tm_eff),)

    itemsize = jnp.dtype(compute_dtype).itemsize
    tile_bytes = tm_eff * L * itemsize
    # double-buffered input + output tiles + resident bd + slack
    vmem_needed = 4 * tile_bytes + 2 * L * L * itemsize + (1 << 20)
    cost = pl.CostEstimate(
        flops=2 * Mp * L * L,
        transcendentals=0,
        bytes_accessed=(2 * Mp * L + L * L) * itemsize,
    )

    out_packed = pl.pallas_call(
        functools.partial(_packed_matvec_kernel, precision=precision),
        out_shape=jax.ShapeDtypeStruct((Mp, L), compute_dtype),
        grid=grid,
        in_specs=[
            pl.BlockSpec((tm_eff, L), lambda i: (i, 0)),   # streamed row tiles
            pl.BlockSpec((L, L), lambda i: (0, 0)),        # block-diag A^T resident
        ],
        out_specs=pl.BlockSpec((tm_eff, L), lambda i: (i, 0)),
        compiler_params=pltpu.CompilerParams(
            dimension_semantics=("parallel",),             # megacore split on v7x
            vmem_limit_bytes=int(min(max(vmem_needed, 16 << 20), 48 << 20)),
        ),
        cost_estimate=cost,
    )(y_packed, bd)

    # ---- unpack (pure reshapes in the common no-padding case) -------------------
    if L != Lraw:
        out_packed = out_packed[:, :Lraw]
    dy = out_packed.reshape(M1, n)
    if M1 != M:
        dy = dy[:M]
    dy = dy.reshape(T, B, n).astype(y.dtype)
    return dy, A_exp


def make_params(n, key):
    """Deterministic parameter init mirroring the PyTorch __init__:
       Ap = rand(n, n); A = Ap.T * Ap (elementwise)."""
    Ap = jax.random.uniform(key, (n, n), dtype=jnp.float32)
    return Ap.T * Ap


if __name__ == "__main__":
    key = jax.random.PRNGKey(0)
    k_param, k_t, k_y = jax.random.split(key, 3)

    n = 32   # hidden size
    T = 8    # "time" / sequence length (t.shape[0])
    B = 2    # batch (t.shape[1])

    A = make_params(n, k_param)
    t = jax.random.normal(k_t, (T, B), dtype=jnp.float32)
    y = jax.random.normal(k_y, (T, B, n), dtype=jnp.float32)

    # force_pallas=True so the Pallas kernel itself runs even at this toy size.
    fwd = jax.jit(functools.partial(simple_linear_system_forward, force_pallas=True))
    dy, A_exp = fwd(t, y, A)
    jax.block_until_ready((dy, A_exp))

    # Reference check in plain JAX (matching f32 precision).
    dy_ref = jnp.einsum("ij,tbj->tbi", A, y, precision=jax.lax.Precision.HIGHEST)
    A_exp_ref = jnp.broadcast_to(A[None, None], (T, B, n, n))
    assert dy.shape == (T, B, n)
    assert A_exp.shape == (T, B, n, n)
    assert jnp.allclose(dy, dy_ref, atol=1e-5, rtol=1e-4)
    assert jnp.allclose(A_exp, A_exp_ref)

    print("KERNEL_OK")
</pallas_src>

<mosaic_0001>
module attributes {stable_mosaic.version = 11 : i64} {
  func.func @_packed_matvec_kernel(%arg0: i32, %arg1: memref<4x128xf32, #tpu.memory_space<vmem>>, %arg2: memref<128x128xf32, #tpu.memory_space<vmem>>, %arg3: memref<4x128xf32, #tpu.memory_space<vmem>>) attributes {dimension_semantics = [#tpu.dimension_semantics<parallel>], iteration_bounds = array<i64: 1>, scalar_prefetch = 0 : i64, scratch_operands = 0 : i64, tpu.core_type = #tpu.core_type<tc>, window_params = [{transform_indices = @transform_0, window_bounds = array<i64: 4, 128>}, {pipeline_mode = #tpu.pipeline_mode<synchronous>, transform_indices = @transform_1, window_bounds = array<i64: 128, 128>}, {transform_indices = @transform_2, window_bounds = array<i64: 4, 128>}]} {
    %c0 = arith.constant 0 : index
    %c0_0 = arith.constant 0 : index
    %0 = vector.load %arg1[%c0, %c0_0] : memref<4x128xf32, #tpu.memory_space<vmem>>, vector<4x128xf32>
    %c0_1 = arith.constant 0 : index
    %c0_2 = arith.constant 0 : index
    %1 = vector.load %arg2[%c0_1, %c0_2] : memref<128x128xf32, #tpu.memory_space<vmem>>, vector<128x128xf32>
    %cst = arith.constant dense<0.000000e+00> : vector<4x128xf32>
    %2 = tpu.matmul %0, %1, %cst {dimension_numbers = #tpu.dot_dimension_numbers<[1], [0], [0], [1], [0, 0, 1, 1], [], []>, precision = #tpu.contract_precision<fp32>} : vector<4x128xf32>, vector<128x128xf32>, vector<4x128xf32> -> vector<4x128xf32>
    %c0_3 = arith.constant 0 : index
    %c0_4 = arith.constant 0 : index
    %3 = vector.load %arg3[%c0_3, %c0_4] : memref<4x128xf32, #tpu.memory_space<vmem>>, vector<4x128xf32>
    tpu.vector_store %arg3[%c0_3, %c0_4], %2 {strides = array<i32>} : memref<4x128xf32, #tpu.memory_space<vmem>>, vector<4x128xf32>,
    return
  }
  func.func @transform_0(%arg0: i32) -> (i32, i32) {
    %c0_i32 = arith.constant 0 : i32
    %c0_i32_0 = arith.constant 0 : i32
    return %arg0, %c0_i32 : i32, i32
  }
  func.func @transform_1(%arg0: i32) -> (i32, i32) {
    %c0_i32 = arith.constant 0 : i32
    %c0_i32_0 = arith.constant 0 : i32
    %c0_i32_1 = arith.constant 0 : i32
    return %c0_i32, %c0_i32_0 : i32, i32
  }
  func.func @transform_2(%arg0: i32) -> (i32, i32) {
    %c0_i32 = arith.constant 0 : i32
    %c0_i32_0 = arith.constant 0 : i32
    return %arg0, %c0_i32 : i32, i32
  }
}

</mosaic_0001>

<bundles_post_ra>
// kernel: simple_linear_system_forward.1
= control target key start
LH: loop header
LB: loop body
LE: loop exit
PB: predicated region body
PF: predicated region fallthrough
CT: control target
= control target key end

     0   :  { %s681_s1 = inlined_call_operand.vmem [shape: f32[128,128], index: 1, kind: input, shape index: {}]   ;;  %s682_s0 = inlined_call_operand.vmem [shape: f32[4,128], index: 0, kind: input, shape index: {}]   ;;  %s683_s2 = inlined_call_operand.vmem [shape: f32[4,128], index: 2, kind: output, shape index: {}]  }
   0x1   :  { %v27_v0 = vld [vmem:[%s681_s1 + $0x78] sm:$0xff]  ;;  %v26_v1 = vld [vmem:[%s681_s1 + $0x70] sm:$0xff]  ;;  %v25_v2 = vld [vmem:[%s681_s1 + $0x68] sm:$0xff] }
   0x2   :  { %v398_v3 = vand.u32 4294901760, %v27_v0  ;;  %v400_v4 = vand.u32 4294901760, %v26_v1  ;;  %v402_v5 = vand.u32 4294901760, %v25_v2  ;;  %v24_v6 = vld [vmem:[%s681_s1 + $0x60] sm:$0xff]  ;;  %v23_v7 = vld [vmem:[%s681_s1 + $0x58] sm:$0xff]  ;;  %v22_v8 = vld [vmem:[%s681_s1 + $0x50] sm:$0xff] }
   0x3   :  { %v413_v9 = vand.u32 4294901760, %v24_v6  ;;  %v415_v10 = vand.u32 4294901760, %v23_v7  ;;  %v417_v11 = vand.u32 4294901760, %v22_v8  ;;  %v21_v12 = vld [vmem:[%s681_s1 + $0x48] sm:$0xff]  ;;  %v20_v13 = vld [vmem:[%s681_s1 + $0x40] sm:$0xff]  ;;  %v19_v18 = vld [vmem:[%s681_s1 + $0x38] sm:$0xff] }
   0x4   :  { %29 = vmatpush.msra.mxu0 %v398_v3  ;;  %v427_v14 = vsub.f32 %v27_v0, %v398_v3  ;;  %v430_v15 = vsub.f32 %v26_v1, %v400_v4  ;;  %v433_v16 = vsub.f32 %v25_v2, %v402_v5  ;;  %v435_v17 = vand.u32 4294901760, %v21_v12  ;;  %225 = vmatpush.msra.mxu3 %v398_v3  ;;  %v18_v26 = vld [vmem:[%s681_s1 + $0x30] sm:$0xff]  ;;  %v17_v36 = vld [vmem:[%s681_s1 + $0x28] sm:$0xff]  ;;  %v16_v42 = vld [vmem:[%s681_s1 + $0x20] sm:$0xff] }
   0x5   :  { %v442_v19 = vsub.f32 %v24_v6, %v413_v9  ;;  %v445_v20 = vsub.f32 %v23_v7, %v415_v10  ;;  %v448_v21 = vsub.f32 %v22_v8, %v417_v11  ;;  %v454_v25 = vand.u32 4294901760, %v20_v13  ;;  %v15_v47 = vld [vmem:[%s681_s1 + $0x18] sm:$0xff]  ;;  %v14_v55 = vld [vmem:[%s681_s1 + $0x10] sm:$0xff]  ;;  %v13_v60 = vld [vmem:[%s681_s1 + $0x8] sm:$0xff] }
   0x6   :  { %31 = vmatpush.msra.mxu0 %v400_v4  ;;  %v71_v22 = vand.u32 4294901760, %v427_v14  ;;  %v77_v23 = vand.u32 4294901760, %v430_v15  ;;  %v83_v24 = vand.u32 4294901760, %v433_v16  ;;  %172 = vmatpush.msra.mxu2 %v427_v14  ;;  %v461_v28 = vand.u32 4294901760, %v19_v18  ;;  %v12_v1 = vld [vmem:[%s681_s1] sm:$0xff] }
   0x7   :  { %v89_v27 = vand.u32 4294901760, %v442_v19  ;;  %v464_v29 = vsub.f32 %v21_v12, %v435_v17  ;;  %227 = vmatpush.msra.mxu3 %v400_v4  ;;  %v95_v33 = vand.u32 4294901760, %v445_v20  ;;  %v101_v34 = vand.u32 4294901760, %v448_v21  ;;  %v11_v7 = vld [vmem:[%s682_s0] sm:$0xf] }
   0x8   :  { %33 = vmatpush.msra.mxu0 %v402_v5  ;;  %v72_v30 = vsub.f32 %v427_v14, %v71_v22  ;;  %v78_v31 = vsub.f32 %v430_v15, %v77_v23  ;;  %v84_v32 = vsub.f32 %v433_v16, %v83_v24  ;;  %175 = vmatpush.msra.mxu2 %v430_v15  ;;  %v480_v35 = vand.u32 4294901760, %v18_v26 }
   0x9   :  { %229 = vmatpush.msra.mxu3 %v402_v5  ;;  %v90_v39 = vsub.f32 %v442_v19, %v89_v27  ;;  %v491_v40 = vsub.f32 %v20_v13, %v454_v25  ;;  %v107_v41 = vand.u32 4294901760, %v464_v29  ;;  %v96_v44 = vsub.f32 %v445_v20, %v95_v33 }
   0xa   :  { %v73_v37 = vand.u32 4294901760, %v72_v30  ;;  %35 = vmatpush.msra.mxu0 %v413_v9  ;;  %v79_v38 = vand.u32 4294901760, %v78_v31  ;;  %178 = vmatpush.msra.mxu2 %v433_v16  ;;  %v85_v43 = vand.u32 4294901760, %v84_v32  ;;  %v503_v45 = vand.u32 4294901760, %v17_v36 }
   0xb   :  { %231 = vmatpush.msra.mxu3 %v413_v9  ;;  %v506_v46 = vsub.f32 %v19_v18, %v461_v28  ;;  %v102_v48 = vsub.f32 %v448_v21, %v101_v34  ;;  %v91_v49 = vand.u32 4294901760, %v90_v39  ;;  %v113_v50 = vand.u32 4294901760, %v491_v40 }
   0xc   :  { %74 = vmatpush.msra.mxu1 %v73_v37  ;;  %37 = vmatpush.msra.mxu0 %v415_v10  ;;  %v518_v51 = vand.u32 4294901760, %v16_v42  ;;  %v521_v52 = vsub.f32 %v18_v26, %v480_v35  ;;  %v108_v53 = vsub.f32 %v464_v29, %v107_v41  ;;  %v526_v54 = vand.u32 4294901760, %v15_v47 }
   0xd   :  { %181 = vmatpush.msra.mxu2 %v442_v19  ;;  %233 = vmatpush.msra.mxu3 %v415_v10  ;;  %v97_v56 = vand.u32 4294901760, %v96_v44  ;;  %v119_v57 = vand.u32 4294901760, %v506_v46  ;;  %v536_v58 = vsub.f32 %v17_v36, %v503_v45  ;;  %v103_v59 = vand.u32 4294901760, %v102_v48 }
   0xe   :  { %80 = vmatpush.msra.mxu1 %v79_v38  ;;  %39 = vmatpush.msra.mxu0 %v417_v11  ;;  %v114_v61 = vsub.f32 %v491_v40, %v113_v50  ;;  %v125_v62 = vand.u32 4294901760, %v521_v52  ;;  %v548_v63 = vand.u32 4294901760, %v14_v55  ;;  %v551_v0 = vsub.f32 %v16_v42, %v518_v51 }
   0xf   :  { %184 = vmatpush.msra.mxu2 %v445_v20  ;;  %235 = vmatpush.msra.mxu3 %v417_v11  ;;  %v109_v2 = vand.u32 4294901760, %v108_v53  ;;  %v557_v6 = vsub.f32 %v15_v47, %v526_v54  ;;  %v120_v8 = vsub.f32 %v506_v46, %v119_v57  ;;  %v131_v12 = vand.u32 4294901760, %v536_v58 }
  0x10   :  { %86 = vmatpush.msra.mxu1 %v85_v43  ;;  %41 = vmatpush.msra.mxu0 %v435_v17  ;;  %v569_v13 = vand.u32 4294901760, %v13_v60  ;;  %v571_v18 = vand.u32 4294901760, %v11_v7  ;;  %v573_v26 = vand.u32 4294901760, %v12_v1  ;;  %v115_v30 = vand.u32 4294901760, %v114_v61 }
  0x11   :  { %187 = vmatpush.msra.mxu2 %v448_v21  ;;  %237 = vmatpush.msra.mxu3 %v435_v17  ;;  %v126_v31 = vsub.f32 %v521_v52, %v125_v62  ;;  %v137_v32 = vand.u32 4294901760, %v551_v0  ;;  %v583_v36 = vsub.f32 %v14_v55, %v548_v63  ;;  %v143_v37 = vand.u32 4294901760, %v557_v6 }
  0x12   :  { %92 = vmatpush.msra.mxu1 %v91_v49  ;;  %43 = vmatpush.msra.mxu0 %v454_v25  ;;  %v121_v38 = vand.u32 4294901760, %v120_v8  ;;  %v132_v39 = vsub.f32 %v536_v58, %v131_v12  ;;  %v593_v42 = vsub.f32 %v13_v60, %v569_v13  ;;  %v61_v43 = vsub.f32 %v11_v7, %v571_v18 }
  0x13   :  { %190 = vmatpush.msra.mxu2 %v464_v29  ;;  %239 = vmatpush.msra.mxu3 %v454_v25  ;;  %v127_v44 = vand.u32 4294901760, %v126_v31  ;;  %v138_v47 = vsub.f32 %v551_v0, %v137_v32  ;;  %v149_v48 = vand.u32 4294901760, %v583_v36  ;;  %v604_v49 = vsub.f32 %v12_v1, %v573_v26 }
  0x14   :  { %98 = vmatpush.msra.mxu1 %v97_v56  ;;  %45 = vmatpush.msra.mxu0 %v461_v28  ;;  %v133_v53 = vand.u32 4294901760, %v132_v39  ;;  %v144_v55 = vsub.f32 %v557_v6, %v143_v37  ;;  %v155_v56 = vand.u32 4294901760, %v593_v42 }
  0x15   :  { %193 = vmatpush.msra.mxu2 %v491_v40  ;;  %241 = vmatpush.msra.mxu3 %v461_v28  ;;  %v139_v60 = vand.u32 4294901760, %v138_v47  ;;  %v150_v61 = vsub.f32 %v583_v36, %v149_v48  ;;  %v161_v1 = vand.u32 4294901760, %v604_v49 }
  0x16   :  { %104 = vmatpush.msra.mxu1 %v103_v59  ;;  %47 = vmatpush.msra.mxu0 %v480_v35  ;;  %v62_v59 = vand.u32 4294901760, %v61_v43  ;;  %v156_v7 = vsub.f32 %v593_v42, %v155_v56 }
  0x17   :  { %196 = vmatpush.msra.mxu2 %v506_v46  ;;  %243 = vmatpush.msra.mxu3 %v480_v35  ;;  %v162_v31 = vsub.f32 %v604_v49, %v161_v1 }
  0x18   :  { %110 = vmatpush.msra.mxu1 %v109_v2  ;;  %49 = vmatpush.msra.mxu0 %v503_v45  ;;  %v145_v2 = vand.u32 4294901760, %v144_v55  ;;  %v63_v8 = vsub.f32 %v61_v43, %v62_v59 }
  0x19   :  { %199 = vmatpush.msra.mxu2 %v521_v52  ;;  %245 = vmatpush.msra.mxu3 %v503_v45 }
  0x1a   :  { %116 = vmatpush.msra.mxu1 %v115_v30  ;;  %51 = vmatpush.msra.mxu0 %v518_v51  ;;  %v151_v30 = vand.u32 4294901760, %v150_v61  ;;  %v64_v39 = vand.u32 4294901760, %v63_v8 }
  0x1b   :  { %202 = vmatpush.msra.mxu2 %v536_v58  ;;  %247 = vmatpush.msra.mxu3 %v518_v51 }
  0x1c   :  { %122 = vmatpush.msra.mxu1 %v121_v38  ;;  %53 = vmatpush.msra.mxu0 %v526_v54  ;;  %v157_v38 = vand.u32 4294901760, %v156_v7 }
  0x1d   :  { %205 = vmatpush.msra.mxu2 %v551_v0  ;;  %249 = vmatpush.msra.mxu3 %v526_v54 }
  0x1e   :  { %128 = vmatpush.msra.mxu1 %v127_v44  ;;  %55 = vmatpush.msra.mxu0 %v548_v63  ;;  %v163_v44 = vand.u32 4294901760, %v162_v31 }
  0x1f   :  { %208 = vmatpush.msra.mxu2 %v557_v6  ;;  %251 = vmatpush.msra.mxu3 %v548_v63 }
  0x20   :  { %134 = vmatpush.msra.mxu1 %v133_v53  ;;  %57 = vmatpush.msra.mxu0 %v569_v13 }
  0x21   :  { %211 = vmatpush.msra.mxu2 %v583_v36  ;;  %253 = vmatpush.msra.mxu3 %v569_v13 }
  0x22   :  { %140 = vmatpush.msra.mxu1 %v139_v60  ;;  %59 = vmatpush.msra.mxu0 %v573_v26 }
  0x23   :  { %214 = vmatpush.msra.mxu2 %v593_v42  ;;  %255 = vmatpush.msra.mxu3 %v573_v26 }
  0x24   :  { %266 = vmatpush.msrb.mxu0 %v71_v22  ;;  %146 = vmatpush.msra.mxu1 %v145_v2 }
  0x25   :  { %217 = vmatpush.msra.mxu2 %v604_v49  ;;  %259 = vmatmul.f32.vlgmr.msra.gmra.mxu3 %v62_v59 }
  0x26   :  { %270 = vmatpush.msrb.mxu0 %v77_v23  ;;  %152 = vmatpush.msra.mxu1 %v151_v30 }
  0x27   :  { %220 = vmatmul.f32.vlgmr.msra.gmra.mxu2 %v61_v43  ;;  %65 = vmatmul.f32.vlgmr.msra.gmra.mxu0 %v64_v39 }
  0x28   :  { %274 = vmatpush.msrb.mxu0 %v83_v24  ;;  %158 = vmatpush.msra.mxu1 %v157_v38 }
  0x2a   :  { %278 = vmatpush.msrb.mxu0 %v89_v27  ;;  %164 = vmatpush.msra.mxu1 %v163_v44 }
  0x2b   :  { %166 = vmatmul.f32.vlgmr.msra.gmra.mxu1 %v571_v18 }
  0x2c   :  { %333 = vmatpush.msrb.mxu1 %v398_v3  ;;  %282 = vmatpush.msrb.mxu0 %v95_v33 }
  0x2e   :  { %335 = vmatpush.msrb.mxu1 %v400_v4  ;;  %286 = vmatpush.msrb.mxu0 %v101_v34 }
  0x30   :  { %337 = vmatpush.msrb.mxu1 %v402_v5  ;;  %290 = vmatpush.msrb.mxu0 %v107_v41 }
  0x32   :  { %339 = vmatpush.msrb.mxu1 %v413_v9  ;;  %294 = vmatpush.msrb.mxu0 %v113_v50 }
  0x34   :  { %341 = vmatpush.msrb.mxu1 %v415_v10  ;;  %298 = vmatpush.msrb.mxu0 %v119_v57 }
  0x36   :  { %343 = vmatpush.msrb.mxu1 %v417_v11  ;;  %302 = vmatpush.msrb.mxu0 %v125_v62 }
  0x38   :  { %345 = vmatpush.msrb.mxu1 %v435_v17  ;;  %306 = vmatpush.msrb.mxu0 %v131_v12 }
  0x3a   :  { %347 = vmatpush.msrb.mxu1 %v454_v25  ;;  %310 = vmatpush.msrb.mxu0 %v137_v32 }
  0x3c   :  { %349 = vmatpush.msrb.mxu1 %v461_v28  ;;  %314 = vmatpush.msrb.mxu0 %v143_v37 }
  0x3e   :  { %351 = vmatpush.msrb.mxu1 %v480_v35  ;;  %318 = vmatpush.msrb.mxu0 %v149_v48 }
  0x40   :  { %353 = vmatpush.msrb.mxu1 %v503_v45  ;;  %322 = vmatpush.msrb.mxu0 %v155_v56 }
  0x42   :  { %355 = vmatpush.msrb.mxu1 %v518_v51  ;;  %326 = vmatpush.msrb.mxu0 %v161_v1 }
  0x43   :  { %328 = vmatmul.f32.vlgmr.msrb.gmra.mxu0 %v571_v18 }
  0x44   :  { %357 = vmatpush.msrb.mxu1 %v526_v54 }
  0x46   :  { %359 = vmatpush.msrb.mxu1 %v548_v63 }
  0x48   :  { %361 = vmatpush.msrb.mxu1 %v569_v13 }
  0x4a   :  { %363 = vmatpush.msrb.mxu1 %v573_v26 }
  0x4b   :  { %365 = vmatmul.f32.vlgmr.msrb.gmra.mxu1 %v571_v18 }
  0xa4   :  { %v66_v4 = vpop.f32.mrf.mxu0 }
  0xa8   :  { %v167_v3 = vpop.f32.mrf.mxu1  ;;  %v260_v11 = vpop.f32.mrf.mxu3 }
  0xa9   :  { %v168_v5 = vadd.f32 %v167_v3, %v66_v4 }
  0xaa   :  { %v221_v9 = vpop.f32.mrf.mxu2 }
  0xab   :  { %v222_v10 = vadd.f32 %v221_v9, %v168_v5 }
  0xad   :  { %v261_v14 = vadd.f32 %v260_v11, %v222_v10 }
  0xc0   :  { %v329_v15 = vpop.f32.mrf.mxu0 }
  0xc1   :  { %v330_v16 = vadd.f32 %v329_v15, %v261_v14 }
  0xc8   :  { %v366_v17 = vpop.f32.mrf.mxu1 }
  0xc9   :  { %v367_v19 = vadd.f32 %v366_v17, %v330_v16 }
  0xcb   :  { %369 = vst [vmem:[%s683_s2] sm:$0xf] %v367_v19 }

</bundles_post_ra>
